<compile_context>
chip_gen: v7x
topology: tpu7x:2x2x1
jax: 0.10.0
libtpu: 0.0.40
codegen_flags: <defaults>
</compile_context>

<pallas_src>
import functools

import jax
import jax.numpy as jnp
from jax.experimental import pallas as pl
from jax.experimental.pallas import tpu as pltpu


def _round_up(x, m):
    return ((x + m - 1) // m) * m


def _cdiv(a, b):
    return (a + b - 1) // b


def _vmem_capacity_bytes():
    # Physical per-TensorCore VMEM (v5e/v6e: 128 MiB, v7x: 64 MiB). Fall back to the
    # smallest (v7x) value if the query is unavailable so sizing stays safe everywhere.
    try:
        info = pltpu.get_tpu_info()
        cap = getattr(info, "vmem_capacity_bytes", None)
        if cap:
            return int(cap)
    except Exception:
        pass
    return 64 * 1024 * 1024


def _patch_embed_kernel(x_ref, w_ref, b_ref, o_ref):
    # x_ref: (tm, Kp)  w_ref: (Kp, Np)  b_ref: (1, Np) f32  o_ref: (tm, Np)
    acc = jnp.dot(x_ref[...], w_ref[...], preferred_element_type=jnp.float32)
    acc = acc + b_ref[...]
    o_ref[...] = acc.astype(o_ref.dtype)


def patch_embeddings(pixel_values, weight, bias, patch_size, *,
                     tm=1024, compute_dtype=jnp.bfloat16, out_dtype=None,
                     allow_input_fusion=True):
    """Pallas implementation of ViTMAEPatchEmbeddings.forward.

    Args:
      pixel_values: (B, C, H, W)  -- NCHW, same as the PyTorch module.
      weight: (hidden, C, ph, pw) -- PyTorch Conv2d weight layout.
      bias:   (hidden,)
      patch_size: (ph, pw)
      tm: requested M (patch-row) tile; auto-clamped to the VMEM budget and to M.
      compute_dtype: dtype of the streamed patches / resident weight (default bf16;
        MXU accumulation is always f32). Pass jnp.float32 for an exact path.
      out_dtype: output dtype (default: pixel_values.dtype, like the module).
      allow_input_fusion: let XLA fuse the patch-extraction transpose/pad/convert
        into the kernel's input side (hint only).
    Returns:
      (B, num_patches, hidden) in out_dtype.
    """
    B, C, H, W = pixel_values.shape
    ph, pw = patch_size
    hidden = weight.shape[0]
    gh, gw = H // ph, W // pw
    num_patches = gh * gw
    K = C * ph * pw
    M = B * num_patches

    odt = jnp.dtype(out_dtype) if out_dtype is not None else pixel_values.dtype
    in_dtype = jnp.dtype(compute_dtype) if compute_dtype is not None else pixel_values.dtype

    # --- glue: extract non-overlapping patches, flatten in (C, ph, pw) order.
    x = pixel_values.reshape(B, C, gh, ph, gw, pw)
    x = jnp.transpose(x, (0, 2, 4, 1, 3, 5))              # (B, gh, gw, C, ph, pw)
    patches = x.reshape(M, K).astype(in_dtype)            # row-major over (b, gh, gw)

    # --- glue: conv weight -> dense projection matrix, bias -> f32 row vector.
    w_mat = weight.reshape(hidden, K).T.astype(in_dtype)  # (K, hidden)
    b_row = bias.reshape(1, hidden).astype(jnp.float32)

    # Lane-pad the contraction dim K -> unmasked lane loads, full MXU passes.
    Kp = _round_up(K, 128)
    if Kp != K:
        patches = jnp.pad(patches, ((0, 0), (0, Kp - K)))
        w_mat = jnp.pad(w_mat, ((0, Kp - K), (0, 0)))

    # Lane-pad hidden -> unmasked, lane-dense output stores.
    Np = _round_up(hidden, 128)
    if Np != hidden:
        w_mat = jnp.pad(w_mat, ((0, 0), (0, Np - hidden)))
        b_row = jnp.pad(b_row, ((0, 0), (0, Np - hidden)))

    in_bytes = jnp.dtype(in_dtype).itemsize
    out_bytes = jnp.dtype(odt).itemsize

    def _vmem_need(t):
        return (2 * t * Kp * in_bytes        # double-buffered streamed patch tiles
                + 2 * t * Np * out_bytes     # double-buffered output tiles
                + Kp * Np * in_bytes         # resident weight (constant block, once)
                + Np * 4)                    # resident bias

    phys = _vmem_capacity_bytes()
    budget = int(phys * 0.65)                # tile-sizing budget, leaves headroom

    # Sublane multiple required by the packed-tile layout of both blocks
    # (8 for f32, 16 for bf16, 32 for int8).
    mult = max(8, 32 // in_bytes, 32 // out_bytes)

    # Pick the largest tile that fits the budget; keep 256-alignment while large.
    tm_eff = min(int(tm), _round_up(M, mult))
    tm_eff = max(_round_up(tm_eff, mult), mult)
    floor = max(mult, min(256, tm_eff))
    while tm_eff > floor and _vmem_need(tm_eff) > budget:
        tm_eff = max(_round_up(tm_eff // 2, mult), floor)

    # If a large M would land on a single grid step, split in two so both v7x
    # TensorCores get work (no effect on single-TC v5e/v6e).
    if _cdiv(M, tm_eff) == 1 and M >= 512:
        tm_eff = max(_round_up(_cdiv(M, 2), mult), mult)

    grid = (_cdiv(M, tm_eff),)               # ragged tail handled by Pallas masking

    safe_cap = int(phys * 0.75)              # 48 MiB on v7x, 96 MiB on v5e/v6e
    vmem_limit = int(min(safe_cap,
                         max(32 * 1024 * 1024, _vmem_need(tm_eff) + 4 * 1024 * 1024)))

    compiler_params = pltpu.CompilerParams(
        dimension_semantics=("parallel",),
        vmem_limit_bytes=vmem_limit,
        allow_input_fusion=[True, False, False] if allow_input_fusion else None,
    )

    out = pl.pallas_call(
        _patch_embed_kernel,
        out_shape=jax.ShapeDtypeStruct((M, Np), odt),
        grid_spec=pltpu.PrefetchScalarGridSpec(
            num_scalar_prefetch=0,
            grid=grid,
            in_specs=[
                pl.BlockSpec((tm_eff, Kp), lambda i: (i, 0)),   # streamed patches
                pl.BlockSpec((Kp, Np), lambda i: (0, 0)),       # resident weight
                pl.BlockSpec((1, Np), lambda i: (0, 0)),        # resident bias
            ],
            out_specs=pl.BlockSpec((tm_eff, Np), lambda i: (i, 0)),
        ),
        compiler_params=compiler_params,
    )(patches, w_mat, b_row)

    if Np != hidden:
        out = out[:, :hidden]
    return out.reshape(B, num_patches, hidden)


def reference(pixel_values, weight, bias, patch_size):
    """Pure-JAX reference (conv via lax.conv_general_dilated)."""
    ph, pw = patch_size
    y = jax.lax.conv_general_dilated(
        pixel_values.astype(jnp.float32),
        weight.astype(jnp.float32),
        window_strides=(ph, pw),
        padding="VALID",
        dimension_numbers=("NCHW", "OIHW", "NCHW"),
    ) + bias.astype(jnp.float32)[None, :, None, None]
    B, hid, gh, gw = y.shape
    return jnp.transpose(y.reshape(B, hid, gh * gw), (0, 2, 1)).astype(pixel_values.dtype)


if __name__ == "__main__":
    # Small config consistent with the module: image 16x16, patch 4x4, C=4, hidden=32.
    B, C, H, W = 2, 4, 16, 16
    patch = (4, 4)
    hidden = 32

    key = jax.random.PRNGKey(0)
    kx, kw, kb = jax.random.split(key, 3)
    pixel_values = jax.random.normal(kx, (B, C, H, W), dtype=jnp.float32)
    weight = jax.random.normal(kw, (hidden, C, patch[0], patch[1]), dtype=jnp.float32) * 0.02
    bias = jax.random.normal(kb, (hidden,), dtype=jnp.float32) * 0.02

    ref = reference(pixel_values, weight, bias, patch)
    num_patches = (H // patch[0]) * (W // patch[1])

    # Default fast path: bf16 streams, f32 MXU accumulation, f32 output.
    fn = jax.jit(functools.partial(patch_embeddings, patch_size=patch))
    out = jax.block_until_ready(fn(pixel_values, weight, bias))
    assert out.shape == (B, num_patches, hidden), out.shape
    assert out.dtype == pixel_values.dtype, out.dtype
    assert jnp.allclose(out, ref, atol=5e-2, rtol=5e-2), float(jnp.max(jnp.abs(out - ref)))

    # Exact f32 path (tight tolerance against the conv reference).
    fn_f32 = jax.jit(functools.partial(patch_embeddings, patch_size=patch,
                                       compute_dtype=jnp.float32))
    out_f32 = jax.block_until_ready(fn_f32(pixel_values, weight, bias))
    assert out_f32.shape == (B, num_patches, hidden), out_f32.shape
    assert jnp.allclose(out_f32, ref, atol=1e-4, rtol=1e-4), \
        float(jnp.max(jnp.abs(out_f32 - ref)))

    print("KERNEL_OK")
</pallas_src>

<mosaic_0001>
module attributes {stable_mosaic.version = 11 : i64} {
  func.func @_patch_embed_kernel(%arg0: i32, %arg1: memref<32x128xbf16, #tpu.memory_space<vmem>>, %arg2: memref<128x128xbf16, #tpu.memory_space<vmem>>, %arg3: memref<1x128xf32, #tpu.memory_space<vmem>>, %arg4: memref<32x128xf32, #tpu.memory_space<vmem>>) attributes {dimension_semantics = [#tpu.dimension_semantics<parallel>], iteration_bounds = array<i64: 1>, scalar_prefetch = 0 : i64, scratch_operands = 0 : i64, tpu.core_type = #tpu.core_type<tc>, window_params = [{transform_indices = @transform_0, window_bounds = array<i64: 32, 128>}, {pipeline_mode = #tpu.pipeline_mode<synchronous>, transform_indices = @transform_1, window_bounds = array<i64: 128, 128>}, {pipeline_mode = #tpu.pipeline_mode<synchronous>, transform_indices = @transform_2, window_bounds = array<i64: 1, 128>}, {transform_indices = @transform_3, window_bounds = array<i64: 32, 128>}]} {
    %c0 = arith.constant 0 : index
    %c0_0 = arith.constant 0 : index
    %0 = vector.load %arg1[%c0, %c0_0] : memref<32x128xbf16, #tpu.memory_space<vmem>>, vector<32x128xbf16>
    %c0_1 = arith.constant 0 : index
    %c0_2 = arith.constant 0 : index
    %1 = vector.load %arg2[%c0_1, %c0_2] : memref<128x128xbf16, #tpu.memory_space<vmem>>, vector<128x128xbf16>
    %cst = arith.constant dense<0.000000e+00> : vector<32x128xf32>
    %2 = tpu.matmul %0, %1, %cst {dimension_numbers = #tpu.dot_dimension_numbers<[1], [0], [0], [1], [0, 0, 1, 1], [], []>} : vector<32x128xbf16>, vector<128x128xbf16>, vector<32x128xf32> -> vector<32x128xf32>
    %c0_3 = arith.constant 0 : index
    %c0_4 = arith.constant 0 : index
    %3 = vector.load %arg3[%c0_3, %c0_4] : memref<1x128xf32, #tpu.memory_space<vmem>>, vector<1x128xf32>
    %4 = vector.broadcast %3 : vector<1x128xf32> to vector<32x128xf32>
    %5 = arith.addf %2, %4 : vector<32x128xf32>
    %c0_5 = arith.constant 0 : index
    %c0_6 = arith.constant 0 : index
    %6 = vector.load %arg4[%c0_5, %c0_6] : memref<32x128xf32, #tpu.memory_space<vmem>>, vector<32x128xf32>
    tpu.vector_store %arg4[%c0_5, %c0_6], %5 {strides = array<i32>} : memref<32x128xf32, #tpu.memory_space<vmem>>, vector<32x128xf32>,
    return
  }
  func.func @transform_0(%arg0: i32) -> (i32, i32) {
    %c0_i32 = arith.constant 0 : i32
    %c0_i32_0 = arith.constant 0 : i32
    return %arg0, %c0_i32 : i32, i32
  }
  func.func @transform_1(%arg0: i32) -> (i32, i32) {
    %c0_i32 = arith.constant 0 : i32
    %c0_i32_0 = arith.constant 0 : i32
    %c0_i32_1 = arith.constant 0 : i32
    return %c0_i32, %c0_i32_0 : i32, i32
  }
  func.func @transform_2(%arg0: i32) -> (i32, i32) {
    %c0_i32 = arith.constant 0 : i32
    %c0_i32_0 = arith.constant 0 : i32
    %c0_i32_1 = arith.constant 0 : i32
    return %c0_i32, %c0_i32_0 : i32, i32
  }
  func.func @transform_3(%arg0: i32) -> (i32, i32) {
    %c0_i32 = arith.constant 0 : i32
    %c0_i32_0 = arith.constant 0 : i32
    return %arg0, %c0_i32 : i32, i32
  }
}

</mosaic_0001>

<bundles_post_ra>
// kernel: patch_embeddings.2
= control target key start
LH: loop header
LB: loop body
LE: loop exit
PB: predicated region body
PF: predicated region fallthrough
CT: control target
= control target key end

     0   :  { %s423_s0 = inlined_call_operand.vmem [shape: bf16[128,128], index: 0, kind: input, shape index: {}]   ;;  %s424_s1 = inlined_call_operand.vmem [shape: f32[1,128], index: 1, kind: input, shape index: {}]   ;;  %s425_s2 = inlined_call_operand.vmem [shape: bf16[32,64], index: 2, kind: input, shape index: {}]   ;;  %s426_s3 = inlined_call_operand.<no memory space> [shape: bf16[], index: 3, kind: input, shape index: {}]   ;;  %s427_s4 = inlined_call_operand.hbm [shape: f32[32,128], index: 4, kind: output, shape index: {}]  }
   0x1   :  { %v9_v0 = vstv %s426_s3 }
   0x2   :  { %v10_v1 = vunpack.i.l.bf16 %v9_v0 }
   0x3   :  { %v312_v2 = vld [vmem:[%s423_s0] sm:$0xff]   ;;  %v33_v3 = vlaneseq  ;;  %v313_v4 = vld [vmem:[%s423_s0 + $0x8] sm:$0xff]   ;;  %v314_v5 = vld [vmem:[%s423_s0 + $0x10] sm:$0xff]  }
   0x4   :  { %288 = vmatprep.subr.bf16.mxu0 %v312_v2  ;;  %v315_v7 = vld [vmem:[%s423_s0 + $0x18] sm:$0xff]   ;;  %v30_v8 = vld [vmem:[%s425_s2] sm:$0xff]   ;;  %v265_v9 = vld [vmem:[%s425_s2 + $0x8] sm:$0xff]  }
   0x5   :  { %289 = vmatpush3.bf16.msra.mxu0 %v312_v2  ;;  %v34_v6 = vand.u32 127, %v33_v3 }
   0x6   :  { %290 = vmatprep.subr.bf16.mxu0 %v313_v4 }
   0x7   :  { %vm36_vm0 = vcmp.lt.s32.totalorder %v34_v6, 64 }
   0x9   :  { %291 = vmatpush3.bf16.msra.mxu0 %v313_v4 }
   0xa   :  { %292 = vmatprep.subr.bf16.mxu0 %v314_v5 }
   0xb   :  { %14 = vsyncpa [#allocation8], 0  ;;  %v31_v10 = vunpack.c.l.bf16 %v30_v8  ;;  %v52_v11 = vunpack.c.h.bf16 %v30_v8  ;;  %v74_v12 = vunpack.c.l.bf16 %v265_v9  ;;  %v96_v13 = vunpack.c.h.bf16 %v265_v9  ;;  %v316_v18 = vld [vmem:[%s423_s0 + $0x20] sm:$0xff]   ;;  %v317_v24 = vld [vmem:[%s423_s0 + $0x28] sm:$0xff]   ;;  %s347_s11 = smov [#allocation7]  }
   0xc   :  { %v346_v19 = vmov 0.0   ;;  %v318_v25 = vld [vmem:[%s423_s0 + $0x30] sm:$0xff]   ;;  %v319_v27 = vld [vmem:[%s423_s0 + $0x38] sm:$0xff]   ;;  %v267_v29 = vld [vmem:[%s424_s1] ss:$0 sm:$0xff]  ;;  %s253_s12 = sshll.u32 %s347_s11, 4  ;;  %s254_s12 = int_to_ptr.vmem [resolvable:$true] %s253_s12 }
   0xd   :  { %293 = vmatpush3.bf16.msra.mxu0 %v314_v5  ;;  %v37_v14 = vsel %vm36_vm0, %v31_v10, %v10_v1  ;;  %v58_v15 = vsel %vm36_vm0, %v52_v11, %v10_v1  ;;  %v80_v16 = vsel %vm36_vm0, %v74_v12, %v10_v1  ;;  %v102_v17 = vsel %vm36_vm0, %v96_v13, %v10_v1  ;;  %s322_s0 = scalar_lea.vmem %s254_s12, 512  ;;  %p327_p1 = scmp.lt.s32.totalorder %s254_s12, %s254_s12 }
   0xe   :  { %294 = vmatprep.subr.bf16.mxu0 %v315_v7  ;;  %v38_v20 = vpack.c.bf16 %v346_v19, %v37_v14  ;;  %v60_v21 = vpack.c.bf16 %v346_v19, %v58_v15  ;;  %v82_v22 = vpack.c.bf16 %v346_v19, %v80_v16  ;;  %v104_v23 = vpack.c.bf16 %v346_v19, %v102_v17  ;;  %p323_p0 = scmp.ne.s32.totalorder %s254_s12, %s322_s0  ;;  %p328_p2 = scmp.lt.s32.totalorder %s322_s0, %s322_s0 }
  0x10   :  { %40 = vst [vmem:[#allocation9] sm:$0xf] %v38_v20  ;;  %62 = vst [vmem:[#allocation9 + $0x4] sm:$0xf] %v60_v21  ;;  %p329_p3 = por %p328_p2, %p327_p1 }
  0x11   :  { %84 = vst [vmem:[#allocation9 + $0x8] sm:$0xf] %v82_v22  ;;  %106 = vst [vmem:[#allocation9 + $0xc] sm:$0xf] %v104_v23  ;;  %295 = vmatpush3.bf16.msra.mxu0 %v315_v7 }
  0x12   :  { %296 = vmatprep.subr.bf16.mxu0 %v316_v18  ;;  %p330_p4 = pnand %p329_p3, %p323_p0 }
  0x15   :  { %297 = vmatpush3.bf16.msra.mxu0 %v316_v18 }
  0x16   :  { %298 = vmatprep.subr.bf16.mxu0 %v317_v24 }
  0x17   :  { %v320_v26 = vld [vmem:[#allocation9] sm:$0xff]  }
  0x18   :  { %304 = vmatprep.mubr.bf16.mxu0 %v320_v26  ;;  %v321_v28 = vld [vmem:[#allocation9 + $0x8] sm:$0xff]  }
  0x19   :  { %299 = vmatpush3.bf16.msra.mxu0 %v317_v24 }
  0x1a   :  { %300 = vmatprep.subr.bf16.mxu0 %v318_v25 }
  0x1d   :  { %301 = vmatpush3.bf16.msra.mxu0 %v318_v25 }
  0x1e   :  { %302 = vmatprep.subr.bf16.mxu0 %v319_v27 }
  0x21   :  { %303 = vmatpush3.bf16.msra.mxu0 %v319_v27 }
  0x24   :  { %305 = vmatmul.mubr.bf16.vlgmr.msra.gmra.mrb[0].mxu0 %v321_v28 }
  0xf7   :  { %v306_v30 = vpop.f32.mrb[0].mxu0 }
  0xf8   :  { %v238_v31 = vadd.f32 %v306_v30, %v267_v29  ;;  %v229_v32 = vpop.f32.mrb[1].mxu0 }
  0xf9   :  { %v230_v33 = vadd.f32 %v267_v29, %v229_v32  ;;  %v307_v34 = vpop.f32.mrb[2].mxu0 }
  0xfa   :  { %246 = vst [vmem:[#allocation7 + $0x10] sm:$0xff] %v238_v31  ;;  %v241_v35 = vadd.f32 %v307_v34, %v267_v29  ;;  %v232_v36 = vpop.f32.mrb[3].mxu0 }
  0xfb   :  { %244 = vst [vmem:[#allocation7] sm:$0xff] %v230_v33  ;;  %v233_v37 = vadd.f32 %v267_v29, %v232_v36 }
  0xfc   :  { %247 = vst [vmem:[#allocation7 + $0x18] sm:$0xff] %v241_v35 }
  0xfd   :  { %245 = vst [vmem:[#allocation7 + $0x8] sm:$0xff] %v233_v37 }
  0xfe   :  { %333 = shalt.err (!%p330_p4)
}
  0xff   :  { %s334_s14 = scalar_lea.hbm %s427_s4, 512 }
 0x100   :  { %p335_p5 = scmp.ne.s32.totalorder %s427_s4, %s334_s14  ;;  %p338_p6 = scmp.lt.u32.totalorder %s334_s14, %s427_s4 }
 0x102   :  { %p340_p7 = pnand %p338_p6, %p335_p5 }
 0x104   :  { %343 = shalt.err (!%p340_p7)
}
 0x105   :  { %s348_s19 = smov 128   ;;  %s349_s20 = smov 8  }
 0x106   :  { %259 = dma.vmem_to_hbm [thread:$0]  %s254_s12, 512, %s427_s4, [#allocation8], %s348_s19, %s348_s19, %s349_s20  }
 0x107   :  { %344 = dma.done.wait [#allocation8], 512  }
 0x108   :  { %345 = vsyncadd [#allocation8], 4294966784 }
 0x109   :  { %263 = vsyncpa [#allocation8], 1 }

</bundles_post_ra>
